<compile_context>
chip_gen: v6e
topology: v6e:2x2x1
jax: 0.10.0
libtpu: 0.0.40
codegen_flags: <defaults>
</compile_context>

<pallas_src>
import jax
import jax.numpy as jnp
from jax.experimental import pallas as pl
from jax.experimental.pallas import tpu as pltpu


def attention_pool_kernel(x_ref, d_ref, w_ref, b_ref, out_ref, num_acc, den_acc):
    # x_ref:   (TB, TT, Din)    VMEM   logits tile
    # d_ref:   (TB, TT, DoutP)  VMEM   decision tile (lane-padded)
    # w_ref:   (Din, DoutP)     VMEM   Linear weight (in x out, lane-padded)
    # b_ref:   (1, DoutP)       VMEM   Linear bias (lane-padded)
    # out_ref: (TB, DoutP)      VMEM   pooled output tile
    # num_acc, den_acc: (TB, DoutP) f32 VMEM scratch, persist across the T grid axis
    k = pl.program_id(1)

    @pl.when(k == 0)
    def _init():
        num_acc[...] = jnp.zeros_like(num_acc)
        den_acc[...] = jnp.zeros_like(den_acc)

    TB, TT, Din = x_ref.shape
    DoutP = w_ref.shape[1]

    # Linear on the MXU with lane-dense N; f32 accumulate. TT is a multiple of 8
    # (or the full T extent) so this flatten is layout-preserving.
    x2 = x_ref[...].reshape(TB * TT, Din)
    z = jnp.dot(x2, w_ref[...], preferred_element_type=jnp.float32) + b_ref[...]

    # clamp(-15, 15); z <= 15 => constant shift of -15 is an exact, stable softmax
    # shift, so no per-(batch, feature) max reduction is needed and the exp
    # accumulates correctly across T tiles.
    e = jnp.exp(jnp.clip(z, -15.0, 15.0) - 15.0).reshape(TB, TT, DoutP)

    den_acc[...] += jnp.sum(e, axis=1)                                   # sum_T exp
    num_acc[...] += jnp.sum(d_ref[...].astype(jnp.float32) * e, axis=1)  # sum_T d*exp

    @pl.when(k == pl.num_programs(1) - 1)
    def _finalize():
        # w = e / S with S = sum_T(e); sum_T(w) == 1, so
        # out = sum_T(d*w) / (sum_T(w) + eps) == sum_T(d*e) / (S * (1 + eps)).
        s = den_acc[...]
        out_ref[...] = (num_acc[...] / (s + s * jnp.float32(1e-07))).astype(out_ref.dtype)


def _pick_tile(n, max_tile, align):
    """Largest divisor of n that is <= max_tile and a multiple of `align`.
    Falls back to the full extent n (full-dim blocks are always layout-legal)."""
    if n <= max_tile:
        return n
    for d in range(max_tile, 0, -1):
        if n % d == 0 and d % align == 0:
            return d
    return n


def attention_pool(logits, decision, W, b, *, tb=None, tt=None):
    """logits: (B,T,Din), decision: (B,T,Dout), W: (Din,Dout), b: (Dout,)."""
    B, T, Din = logits.shape
    Dout = W.shape[1]
    assert decision.shape == (B, T, Dout)

    # Lane-dense feature dim: pad Dout up to a multiple of 128 (min 128).
    DoutP = max(128, ((Dout + 127) // 128) * 128)
    pad = DoutP - Dout
    Wp = jnp.pad(W, ((0, 0), (0, pad)))
    bp = jnp.pad(b, (0, pad)).reshape(1, DoutP)
    dp = jnp.pad(decision, ((0, 0), (0, 0), (0, pad)))
    # NOTE: for extreme T*B where the padded `decision` HBM read dominates, keep
    # decision unpadded and lane-slice e inside the kernel instead.

    # Tile sizes: TB over batch (out-block sublane constraint: mult of 8 or == B),
    # TT over time (mult of 8 or == T). Defaults keep each input block a few MiB
    # (fits v7x's smaller VMEM) and give an MXU M dim of TB*TT >= 256.
    TB = tb if tb is not None else _pick_tile(B, 8, 8)
    TT = tt if tt is not None else _pick_tile(T, 256, 8)
    assert B % TB == 0 and T % TT == 0
    grid = (B // TB, T // TT)

    out_p = pl.pallas_call(
        attention_pool_kernel,
        out_shape=jax.ShapeDtypeStruct((B, DoutP), logits.dtype),
        grid_spec=pltpu.PrefetchScalarGridSpec(
            num_scalar_prefetch=0,
            grid=grid,
            in_specs=[
                pl.BlockSpec((TB, TT, Din), lambda i, k: (i, k, 0)),
                pl.BlockSpec((TB, TT, DoutP), lambda i, k: (i, k, 0)),
                pl.BlockSpec((Din, DoutP), lambda i, k: (0, 0)),   # resident weights
                pl.BlockSpec((1, DoutP), lambda i, k: (0, 0)),     # resident bias
            ],
            out_specs=pl.BlockSpec((TB, DoutP), lambda i, k: (i, 0)),
            scratch_shapes=[
                pltpu.VMEM((TB, DoutP), jnp.float32),   # num accumulator
                pltpu.VMEM((TB, DoutP), jnp.float32),   # den accumulator
            ],
        ),
        compiler_params=pltpu.CompilerParams(
            dimension_semantics=("parallel", "arbitrary"),
            vmem_limit_bytes=48 * 1024 * 1024,
        ),
    )(logits, dp, Wp, bp)
    return out_p[:, :Dout]


def attention_pool_reference(logits, decision, W, b):
    z = jnp.clip(logits @ W + b, -15.0, 15.0)
    w = jax.nn.softmax(z, axis=1)
    return (decision * w).sum(axis=1) / (w.sum(axis=1) + 1e-07)


def _run_case(key, B, T, Din, Dout):
    k_logits, k_decision, k_w, k_b = jax.random.split(key, 4)
    logits = jax.random.normal(k_logits, (B, T, Din), dtype=jnp.float32)
    decision = jax.random.uniform(k_decision, (B, T, Dout), dtype=jnp.float32)
    # Deterministic nn.Linear-style init: U(-1/sqrt(Din), 1/sqrt(Din)).
    bound = 1.0 / (Din ** 0.5)
    W = jax.random.uniform(k_w, (Din, Dout), dtype=jnp.float32,
                           minval=-bound, maxval=bound)
    b = jax.random.uniform(k_b, (Dout,), dtype=jnp.float32,
                           minval=-bound, maxval=bound)

    out = attention_pool(logits, decision, W, b)
    jax.block_until_ready(out)

    ref = attention_pool_reference(logits, decision, W, b)
    assert out.shape == (B, Dout)
    assert jnp.allclose(out, ref, atol=1e-5, rtol=1e-4), \
        f"mismatch vs reference at shape B={B} T={T} Din={Din} Dout={Dout}"


if __name__ == "__main__":
    key = jax.random.PRNGKey(0)
    k0, k1 = jax.random.split(key, 2)

    # Small shape (single grid step).
    _run_case(k0, B=2, T=8, Din=32, Dout=10)
    # Larger shape exercising the (B, T) grid + T-axis accumulation (grid=(2, 2)).
    _run_case(k1, B=16, T=512, Din=32, Dout=10)

    print("KERNEL_OK")
</pallas_src>

<mosaic_0001>
module attributes {stable_mosaic.version = 11 : i64} {
  func.func @attention_pool_kernel(%arg0: i32, %arg1: i32, %arg2: memref<2x8x32xf32, #tpu.memory_space<vmem>>, %arg3: memref<2x8x128xf32, #tpu.memory_space<vmem>>, %arg4: memref<32x128xf32, #tpu.memory_space<vmem>>, %arg5: memref<1x128xf32, #tpu.memory_space<vmem>>, %arg6: memref<2x128xf32, #tpu.memory_space<vmem>>, %arg7: memref<2x128xf32, #tpu.memory_space<vmem>>, %arg8: memref<2x128xf32, #tpu.memory_space<vmem>>) attributes {dimension_semantics = [#tpu.dimension_semantics<parallel>, #tpu.dimension_semantics<arbitrary>], iteration_bounds = array<i64: 1, 1>, scalar_prefetch = 0 : i64, scratch_operands = 2 : i64, tpu.core_type = #tpu.core_type<tc>, window_params = [{transform_indices = @transform_0, window_bounds = array<i64: 2, 8, 32>}, {transform_indices = @transform_1, window_bounds = array<i64: 2, 8, 128>}, {pipeline_mode = #tpu.pipeline_mode<synchronous>, transform_indices = @transform_2, window_bounds = array<i64: 32, 128>}, {pipeline_mode = #tpu.pipeline_mode<synchronous>, transform_indices = @transform_3, window_bounds = array<i64: 1, 128>}, {transform_indices = @transform_4, window_bounds = array<i64: 2, 128>}]} {
    %c0_i32 = arith.constant 0 : i32
    %0 = arith.cmpi eq, %arg1, %c0_i32 : i32
    %1 = arith.extui %0 : i1 to i32
    %c0_i32_0 = arith.constant 0 : i32
    %2 = arith.cmpi ne, %1, %c0_i32_0 : i32
    scf.if %2 {
      %cst_25 = arith.constant 0.000000e+00 : f32
      %31 = vector.broadcast %cst_25 : f32 to vector<2x128xf32>
      %c0_26 = arith.constant 0 : index
      %c0_27 = arith.constant 0 : index
      %32 = vector.load %arg7[%c0_26, %c0_27] : memref<2x128xf32, #tpu.memory_space<vmem>>, vector<2x128xf32>
      tpu.vector_store %arg7[%c0_26, %c0_27], %31 {strides = array<i32>} : memref<2x128xf32, #tpu.memory_space<vmem>>, vector<2x128xf32>,
      %cst_28 = arith.constant 0.000000e+00 : f32
      %33 = vector.broadcast %cst_28 : f32 to vector<2x128xf32>
      %c0_29 = arith.constant 0 : index
      %c0_30 = arith.constant 0 : index
      %34 = vector.load %arg8[%c0_29, %c0_30] : memref<2x128xf32, #tpu.memory_space<vmem>>, vector<2x128xf32>
      tpu.vector_store %arg8[%c0_29, %c0_30], %33 {strides = array<i32>} : memref<2x128xf32, #tpu.memory_space<vmem>>, vector<2x128xf32>,
    } else {
    }
    %c0 = arith.constant 0 : index
    %c0_1 = arith.constant 0 : index
    %c0_2 = arith.constant 0 : index
    %3 = vector.load %arg2[%c0, %c0_1, %c0_2] : memref<2x8x32xf32, #tpu.memory_space<vmem>>, vector<2x8x32xf32>
    %4 = vector.shape_cast %3 : vector<2x8x32xf32> to vector<16x32xf32>
    %c0_3 = arith.constant 0 : index
    %c0_4 = arith.constant 0 : index
    %5 = vector.load %arg4[%c0_3, %c0_4] : memref<32x128xf32, #tpu.memory_space<vmem>>, vector<32x128xf32>
    %cst = arith.constant dense<0.000000e+00> : vector<16x128xf32>
    %6 = tpu.matmul %4, %5, %cst {dimension_numbers = #tpu.dot_dimension_numbers<[1], [0], [0], [1], [0, 0, 1, 1], [], []>} : vector<16x32xf32>, vector<32x128xf32>, vector<16x128xf32> -> vector<16x128xf32>
    %c0_5 = arith.constant 0 : index
    %c0_6 = arith.constant 0 : index
    %7 = vector.load %arg5[%c0_5, %c0_6] : memref<1x128xf32, #tpu.memory_space<vmem>>, vector<1x128xf32>
    %8 = vector.broadcast %7 : vector<1x128xf32> to vector<16x128xf32>
    %9 = arith.addf %6, %8 : vector<16x128xf32>
    %cst_7 = arith.constant -1.500000e+01 : f32
    %cst_8 = arith.constant 1.500000e+01 : f32
    %10 = vector.broadcast %cst_7 : f32 to vector<16x128xf32>
    %11 = arith.maximumf %10, %9 : vector<16x128xf32>
    %12 = vector.broadcast %cst_8 : f32 to vector<16x128xf32>
    %13 = arith.minimumf %12, %11 : vector<16x128xf32>
    %cst_9 = arith.constant 1.500000e+01 : f32
    %14 = vector.broadcast %cst_9 : f32 to vector<16x128xf32>
    %15 = arith.subf %13, %14 : vector<16x128xf32>
    %16 = math.exp %15 : vector<16x128xf32>
    %17 = vector.shape_cast %16 : vector<16x128xf32> to vector<2x8x128xf32>
    %c0_10 = arith.constant 0 : index
    %c0_11 = arith.constant 0 : index
    %18 = vector.load %arg8[%c0_10, %c0_11] : memref<2x128xf32, #tpu.memory_space<vmem>>, vector<2x128xf32>
    %cst_12 = arith.constant dense<0.000000e+00> : vector<2x128xf32>
    %19 = vector.multi_reduction <add>, %17, %cst_12 [1] : vector<2x8x128xf32> to vector<2x128xf32>
    %20 = arith.addf %18, %19 : vector<2x128xf32>
    %c0_13 = arith.constant 0 : index
    %c0_14 = arith.constant 0 : index
    %21 = vector.load %arg8[%c0_13, %c0_14] : memref<2x128xf32, #tpu.memory_space<vmem>>, vector<2x128xf32>
    tpu.vector_store %arg8[%c0_13, %c0_14], %20 {strides = array<i32>} : memref<2x128xf32, #tpu.memory_space<vmem>>, vector<2x128xf32>,
    %c0_15 = arith.constant 0 : index
    %c0_16 = arith.constant 0 : index
    %22 = vector.load %arg7[%c0_15, %c0_16] : memref<2x128xf32, #tpu.memory_space<vmem>>, vector<2x128xf32>
    %c0_17 = arith.constant 0 : index
    %c0_18 = arith.constant 0 : index
    %c0_19 = arith.constant 0 : index
    %23 = vector.load %arg3[%c0_17, %c0_18, %c0_19] : memref<2x8x128xf32, #tpu.memory_space<vmem>>, vector<2x8x128xf32>
    %24 = arith.mulf %23, %17 : vector<2x8x128xf32>
    %cst_20 = arith.constant dense<0.000000e+00> : vector<2x128xf32>
    %25 = vector.multi_reduction <add>, %24, %cst_20 [1] : vector<2x8x128xf32> to vector<2x128xf32>
    %26 = arith.addf %22, %25 : vector<2x128xf32>
    %c0_21 = arith.constant 0 : index
    %c0_22 = arith.constant 0 : index
    %27 = vector.load %arg7[%c0_21, %c0_22] : memref<2x128xf32, #tpu.memory_space<vmem>>, vector<2x128xf32>
    tpu.vector_store %arg7[%c0_21, %c0_22], %26 {strides = array<i32>} : memref<2x128xf32, #tpu.memory_space<vmem>>, vector<2x128xf32>,
    %c0_i32_23 = arith.constant 0 : i32
    %28 = arith.cmpi eq, %arg1, %c0_i32_23 : i32
    %29 = arith.extui %28 : i1 to i32
    %c0_i32_24 = arith.constant 0 : i32
    %30 = arith.cmpi ne, %29, %c0_i32_24 : i32
    scf.if %30 {
      %c0_25 = arith.constant 0 : index
      %c0_26 = arith.constant 0 : index
      %31 = vector.load %arg8[%c0_25, %c0_26] : memref<2x128xf32, #tpu.memory_space<vmem>>, vector<2x128xf32>
      %c0_27 = arith.constant 0 : index
      %c0_28 = arith.constant 0 : index
      %32 = vector.load %arg7[%c0_27, %c0_28] : memref<2x128xf32, #tpu.memory_space<vmem>>, vector<2x128xf32>
      %cst_29 = arith.constant 1.000000e-07 : f32
      %33 = vector.broadcast %cst_29 : f32 to vector<2x128xf32>
      %34 = arith.mulf %31, %33 : vector<2x128xf32>
      %35 = arith.addf %31, %34 : vector<2x128xf32>
      %36 = arith.divf %32, %35 : vector<2x128xf32>
      %c0_30 = arith.constant 0 : index
      %c0_31 = arith.constant 0 : index
      %37 = vector.load %arg6[%c0_30, %c0_31] : memref<2x128xf32, #tpu.memory_space<vmem>>, vector<2x128xf32>
      tpu.vector_store %arg6[%c0_30, %c0_31], %36 {strides = array<i32>} : memref<2x128xf32, #tpu.memory_space<vmem>>, vector<2x128xf32>,
    } else {
    }
    return
  }
  func.func @transform_0(%arg0: i32, %arg1: i32) -> (i32, i32, i32) {
    %c0_i32 = arith.constant 0 : i32
    %c0_i32_0 = arith.constant 0 : i32
    return %arg0, %arg1, %c0_i32 : i32, i32, i32
  }
  func.func @transform_1(%arg0: i32, %arg1: i32) -> (i32, i32, i32) {
    %c0_i32 = arith.constant 0 : i32
    %c0_i32_0 = arith.constant 0 : i32
    return %arg0, %arg1, %c0_i32 : i32, i32, i32
  }
  func.func @transform_2(%arg0: i32, %arg1: i32) -> (i32, i32) {
    %c0_i32 = arith.constant 0 : i32
    %c0_i32_0 = arith.constant 0 : i32
    %c0_i32_1 = arith.constant 0 : i32
    return %c0_i32, %c0_i32_0 : i32, i32
  }
  func.func @transform_3(%arg0: i32, %arg1: i32) -> (i32, i32) {
    %c0_i32 = arith.constant 0 : i32
    %c0_i32_0 = arith.constant 0 : i32
    %c0_i32_1 = arith.constant 0 : i32
    return %c0_i32, %c0_i32_0 : i32, i32
  }
  func.func @transform_4(%arg0: i32, %arg1: i32) -> (i32, i32) {
    %c0_i32 = arith.constant 0 : i32
    %c0_i32_0 = arith.constant 0 : i32
    return %arg0, %c0_i32 : i32, i32
  }
}

</mosaic_0001>

<bundles_post_ra>
// kernel: tpu_custom_call.1
= control target key start
LH: loop header
LB: loop body
LE: loop exit
PB: predicated region body
PF: predicated region fallthrough
CT: control target
= control target key end

     0   :  { %9 = vsyncpa [#allocation5], 0  ;;  %s411_s0 = inlined_call_operand.hbm [shape: f32[2,8,32], index: 0, kind: input, shape index: {}]   ;;  %s412_s1 = inlined_call_operand.hbm [shape: f32[2,8,128], index: 1, kind: input, shape index: {}]   ;;  %s413_s2 = inlined_call_operand.hbm [shape: f32[32,128], index: 2, kind: input, shape index: {}]   ;;  %s414_s3 = inlined_call_operand.vmem [shape: f32[1,128], index: 3, kind: input, shape index: {}]   ;;  %s415_s4 = inlined_call_operand.hbm [shape: f32[2,128], index: 4, kind: output, shape index: {}]  }
   0x1   :  { %10 = vsyncpa [#allocation8], 0 }
   0x2   :  { %11 = vsyncpa [#allocation6], 0  ;;  %s362_s15 = smov [#allocation7]   ;;  %s363_s17 = smov [#allocation4]  }
   0x3   :  { %s29_s16 = sshll.u32 %s362_s15, 4  ;;  %s17_s18 = sshll.u32 %s363_s17, 4  ;;  %s30_s16 = int_to_ptr.vmem [resolvable:$true] %s29_s16  ;;  %s18_s18 = int_to_ptr.vmem [resolvable:$true] %s17_s18 }
   0x4   :  { %s284_s19 = scalar_lea.vmem %s30_s16, 256  ;;  %p289_p1 = scmp.lt.s32.totalorder %s30_s16, %s30_s16 }
   0x5   :  { %p285_p0 = scmp.ne.s32.totalorder %s30_s16, %s284_s19  ;;  %p290_p2 = scmp.lt.s32.totalorder %s284_s19, %s284_s19 }
   0x7   :  { %p291_p3 = por %p290_p2, %p289_p1 }
   0x9   :  { %p292_p4 = pnand %p291_p3, %p285_p0 }
   0xb   :  { %295 = shalt.err (!%p292_p4)
}
   0xc   :  { %s364_s20 = smov 128   ;;  %s365_s21 = smov 8  }
   0xd   :  { %35 = dma.hbm_to_vmem [thread:$0]  %s412_s1, 256, %s30_s16, [#allocation8], %s364_s20, %s364_s20, %s365_s21  }
   0xe   :  { %s304_s24 = scalar_lea.vmem %s18_s18, 256  ;;  %p309_p6 = scmp.lt.s32.totalorder %s18_s18, %s18_s18 }
   0xf   :  { %p305_p5 = scmp.ne.s32.totalorder %s18_s18, %s304_s24  ;;  %p310_p7 = scmp.lt.s32.totalorder %s304_s24, %s304_s24 }
  0x11   :  { %p311_p8 = por %p310_p7, %p309_p6 }
  0x13   :  { %p312_p9 = pnand %p311_p8, %p305_p5 }
  0x15   :  { %315 = shalt.err (!%p312_p9)
}
  0x16   :  { %23 = dma.hbm_to_vmem [thread:$0]  %s411_s0, 256, %s18_s18, [#allocation5], %s364_s20, %s364_s20, %s365_s21  }
  0x17   :  { %s366_s27 = smov [#allocation9]  }
  0x18   :  { %s41_s28 = sshll.u32 %s366_s27, 4  ;;  %s42_s28 = int_to_ptr.vmem [resolvable:$true] %s41_s28 }
  0x19   :  { %s324_s29 = scalar_lea.vmem %s42_s28, 512  ;;  %p329_p11 = scmp.lt.s32.totalorder %s42_s28, %s42_s28 }
  0x1a   :  { %p325_p10 = scmp.ne.s32.totalorder %s42_s28, %s324_s29  ;;  %p330_p12 = scmp.lt.s32.totalorder %s324_s29, %s324_s29 }
  0x1c   :  { %p331_p13 = por %p330_p12, %p329_p11 }
  0x1e   :  { %p332_p0 = pnand %p331_p13, %p325_p10 }
  0x20   :  { %335 = shalt.err (!%p332_p0)
}
  0x21   :  { %47 = dma.hbm_to_vmem [thread:$0]  %s413_s2, 512, %s42_s28, [#allocation8], %s364_s20, %s364_s20, %s365_s21  }
  0x22   :  { %356 = dma.done.wait [#allocation5], 256  }
  0x23   :  { %357 = vsyncadd [#allocation5], 4294967040 }
  0x24   :  { %358 = dma.done.wait [#allocation8], 768  }
  0x25   :  { %359 = vsyncadd [#allocation8], 4294966528  ;;  %vm78_vm0 = vcmask 261120   ;;  %v70_v0 = vld [vmem:[#allocation9 + $0x18] sm:$0xff]  ;;  %v69_v1 = vld [vmem:[#allocation9 + $0x10] sm:$0xff]  ;;  %v367_v6 = vmov 0.0  }
  0x26   :  { %252 = vmatprep.subr.mxu0 %v70_v0  ;;  %v65_v2 = vld [vmem:[#allocation4] sm:$0xff]  ;;  %v68_v3 = vld [vmem:[#allocation9 + $0x8] sm:$0xff]  ;;  %63 = vst [vmem:[#allocation2] sm:$0x3] %v367_v6  ;;  %64 = vst [vmem:[#allocation3] sm:$0x3] %v367_v6 }
  0x27   :  { %253 = vmatpush3.msra.mxu0 %v70_v0  ;;  %260 = vmatprep.mubr.msk.f32.mxu0 %vm78_vm0, %v65_v2  ;;  %v67_v4 = vld [vmem:[#allocation9] sm:$0xff]  ;;  %v66_v5 = vld [vmem:[#allocation4 + $0x8] sm:$0xff]  ;;  %v239_v7 = vld [vmem:[%s414_s3] ss:$0 sm:$0xff]  ;;  %vm185_vm1 = vcmask 1041409   ;;  %s368_s3 = smov [#allocation10]  }
  0x28   :  { %254 = vmatprep.subr.mxu0 %v69_v1  ;;  %v192_v18 = vld [vmem:[#allocation7 + $0x8] sm:$0xff]  ;;  %v191_v20 = vld [vmem:[#allocation7] sm:$0xff]  ;;  %s229_s5 = sshll.u32 %s368_s3, 4  ;;  %s230_s5 = int_to_ptr.vmem [resolvable:$true] %s229_s5 }
  0x29   :  { %255 = vmatpush3.msra.mxu0 %v69_v1  ;;  %s336_s6 = scalar_lea.vmem %s230_s5, 32  ;;  %p341_p2 = scmp.lt.s32.totalorder %s230_s5, %s230_s5 }
  0x2a   :  { %256 = vmatprep.subr.mxu0 %v68_v3  ;;  %p337_p1 = scmp.ne.s32.totalorder %s230_s5, %s336_s6  ;;  %p342_p3 = scmp.lt.s32.totalorder %s336_s6, %s336_s6 }
  0x2b   :  { %257 = vmatpush3.msra.mxu0 %v68_v3 }
  0x2c   :  { %258 = vmatprep.subr.mxu0 %v67_v4  ;;  %p343_p4 = por %p342_p3, %p341_p2 }
  0x2d   :  { %259 = vmatpush3.msra.mxu0 %v67_v4  ;;  %v170_v46 = vld [vmem:[#allocation3] sm:$0x3]  ;;  %v190_v50 = vld [vmem:[#allocation2] sm:$0x3] }
  0x2e   :  { %261 = vmatmul.mubr.msk.f32.vlgmr.msra.gmra.mxu0 %vm78_vm0, %v66_v5  ;;  %p344_p5 = pnand %p343_p4, %p337_p1 }
  0xee   :  { %v262_v8 = vpop.f32.mrf.mxu0 }
  0xef   :  { %v157_v9 = vadd.f32 %v262_v8, %v239_v7 }
  0xf0   :  { %v151_v10 = vpop.f32.mrf.mxu0 }
  0xf1   :  { %v243_v11 = vclamps-f32 %v157_v9, 15.0  ;;  %v152_v12 = vadd.f32 %v239_v7, %v151_v10 }
  0xf3   :  { %v245_v13 = vadd.f32 -15.0, %v243_v11  ;;  %v242_v14 = vclamps-f32 %v152_v12, 15.0 }
  0xf5   :  { %v168_v15 = vmul.f32 1.442695, %v245_v13  ;;  %v244_v16 = vadd.f32 -15.0, %v242_v14 }
  0xf7   :  { %270 = vpow2.f32 %v168_v15  ;;  %v166_v17 = vmul.f32 1.442695, %v244_v16 }
  0xf9   :  { %272 = vpow2.f32 %v166_v17 }
 0x104   :  { %v271_v19 = vpop.eup %270 }
 0x105   :  { %v177_v21 = vrot.slane %v271_v19, 4  ;;  %v194_v22 = vmul.f32 %v271_v19, %v192_v18 }
 0x106   :  { %v273_v23 = vpop.eup %272 }
 0x107   :  { %v178_v24 = vadd.f32 %v271_v19, %v177_v21  ;;  %v201_v25 = vrot.slane %v194_v22, 4  ;;  %v171_v26 = vrot.slane %v273_v23, 4  ;;  %v193_v27 = vmul.f32 %v273_v23, %v191_v20 }
 0x109   :  { %v179_v28 = vrot.slane %v178_v24, 2  ;;  %v202_v29 = vadd.f32 %v201_v25, %v194_v22  ;;  %v172_v30 = vadd.f32 %v273_v23, %v171_v26  ;;  %v195_v31 = vrot.slane %v193_v27, 4 }
 0x10b   :  { %v180_v32 = vadd.f32 %v179_v28, %v178_v24  ;;  %v203_v33 = vrot.slane %v202_v29, 2  ;;  %v173_v34 = vrot.slane %v172_v30, 2  ;;  %v196_v35 = vadd.f32 %v195_v31, %v193_v27 }
 0x10d   :  { %v181_v36 = vrot.slane %v180_v32, 1  ;;  %v204_v37 = vadd.f32 %v203_v33, %v202_v29  ;;  %v174_v38 = vadd.f32 %v173_v34, %v172_v30  ;;  %v197_v39 = vrot.slane %v196_v35, 2 }
 0x10f   :  { %v205_v40 = vrot.slane %v204_v37, 1  ;;  %v175_v41 = vrot.slane %v174_v38, 1  ;;  %v198_v42 = vadd.f32 %v197_v39, %v196_v35  ;;  %v182_v43 = vadd.f32 %v181_v36, %v180_v32 }
 0x111   :  { %v176_v44 = vadd.f32 %v175_v41, %v174_v38  ;;  %v199_v45 = vrot.slane %v198_v42, 1  ;;  %v206_v47 = vadd.f32 %v205_v40, %v204_v37 }
 0x113   :  { %v186_v48 = vsel %vm185_vm1, %v182_v43, %v176_v44  ;;  %v200_v49 = vadd.f32 %v199_v45, %v198_v42 }
 0x114   :  { %v188_v51 = vadd.f32 %v186_v48, %v170_v46 }
 0x115   :  { %v209_v52 = vsel %vm185_vm1, %v206_v47, %v200_v49 }
 0x116   :  { %189 = vst [vmem:[#allocation3] sm:$0x3] %v188_v51  ;;  %v211_v53 = vadd.f32 %v209_v52, %v190_v50 }
 0x118   :  { %212 = vst [vmem:[#allocation2] sm:$0x3] %v211_v53 }
 0x11d   :  { %v216_v54 = vld [vmem:[#allocation3] sm:$0x3] }
 0x11e   :  { %v218_v55 = vmul.f32 1e-07, %v216_v54 }
 0x11f   :  { %v217_v58 = vld [vmem:[#allocation2] sm:$0x3] }
 0x120   :  { %v219_v56 = vadd.f32 %v218_v55, %v216_v54 }
 0x122   :  { %274 = vrcp.f32 %v219_v56 }
 0x12f   :  { %v275_v57 = vpop.eup %274 }
 0x130   :  { %v221_v59 = vmul.f32 %v275_v57, %v217_v58 }
 0x132   :  { %222 = vst [vmem:[#allocation10] sm:$0x3] %v221_v59 }
 0x133   :  { %347 = shalt.err (!%p344_p5)
}
 0x134   :  { %232 = dma.vmem_to_hbm [thread:$0]  %s230_s5, 32, %s415_s4, [#allocation6]  }
 0x135   :  { %360 = dma.done.wait [#allocation6], 32  }
 0x136   :  { %361 = vsyncadd [#allocation6], 4294967264 }
 0x137   :  { %236 = vsyncpa [#allocation5], 1 }
 0x138   :  { %237 = vsyncpa [#allocation8], 1 }
 0x139   :  { %238 = vsyncpa [#allocation6], 1 }

</bundles_post_ra>
